<compile_context>
chip_gen: v7x
topology: tpu7x:2x2x1
jax: 0.10.0
libtpu: 0.0.40
codegen_flags: <defaults>
</compile_context>

<pallas_src>
import jax
import jax.numpy as jnp
from jax.experimental import pallas as pl
from jax.experimental.pallas import tpu as pltpu


def _make_kernel(H, Hp, spare_col, fuse_concat):
    f32, bf16 = jnp.float32, jnp.bfloat16
    # Native MXU contraction forms -- no materialized transposes.
    AB_T = (((1,), (1,)), ((), ()))   # A @ B^T   (contract last dims)
    A_TB = (((0,), (0,)), ((), ()))   # A^T @ B   (contract first dims)

    def kernel(t_ref, m_ref, wt_ref, bt_ref, wm_ref, bm_ref, wc_ref, bc_ref,
               out_ref, meta_raw_ref, colsum_ref, cat_ref):
        t = t_ref[...]                      # (S, Hp) bf16, also the text "values"
        m = m_ref[...]                      # (S, Hp) bf16, meta "values" (+ packed 1.0 col)

        # Linear projections: bf16 MXU feed, f32 accumulation, f32 bias add.
        tq = jnp.dot(t, wt_ref[...], preferred_element_type=f32) + bt_ref[...]
        mq = jnp.dot(m, wm_ref[...], preferred_element_type=f32) + bm_ref[...]

        # affinity = tq @ mq.T expressed natively as an A.B^T contraction.
        affinity = jax.lax.dot_general(tq.astype(bf16), mq.astype(bf16),
                                       dimension_numbers=AB_T,
                                       preferred_element_type=f32)     # (S, S)

        # ---- text side: row softmax, normalize AFTER the context matmul ----
        a_max = jnp.max(affinity, axis=1, keepdims=True)               # (S, 1)
        a_exp = jnp.exp(affinity - a_max)                              # only hot-path S^2 exp
        a_exp_bf = a_exp.astype(bf16)                                  # single bf16 cast, reused
        row_sum = jnp.sum(a_exp, axis=1, keepdims=True)                # (S, 1)
        text_ctx = jnp.dot(a_exp_bf, t, preferred_element_type=f32) / row_sum

        # ---- meta side: column softmax without a second hot-path S^2 exp ----
        # softmax is shift-invariant: exp(aff - g) (g = global max) normalizes
        # to the exact column attention and equals a_exp rescaled by the
        # rank-1 factor d = exp(a_max - g), folded into the matmul RHS.
        g11 = jnp.max(a_max, axis=0, keepdims=True)                    # (1, 1)
        d = jnp.exp(a_max - g11)                                       # (S, 1)
        colmax = jnp.max(affinity, axis=0, keepdims=True)              # (1, S) XLU sublane reduce
        gap = (g11 - jnp.min(colmax, axis=1, keepdims=True))[0, 0]
        need_fallback = gap > 80.0    # exp(aff - g) would underflow a whole column

        @pl.when(jnp.logical_not(need_fallback))
        def _():
            rhs = (m.astype(f32) * d).astype(bf16)        # (S, Hp); packed col -> d
            meta_raw_ref[...] = jax.lax.dot_general(
                a_exp_bf, rhs, dimension_numbers=A_TB, preferred_element_type=f32)
            if not spare_col:
                colsum_ref[...] = jax.lax.dot_general(
                    a_exp_bf, d.astype(bf16), dimension_numbers=A_TB,
                    preferred_element_type=f32)

        @pl.when(need_fallback)
        def _():
            # Cold path: exact per-column shift (extra S^2 exp, runtime-skipped
            # unless the affinity dynamic range exceeds ~80).
            e2 = jnp.exp(affinity - colmax).astype(bf16)
            meta_raw_ref[...] = jax.lax.dot_general(
                e2, m, dimension_numbers=A_TB, preferred_element_type=f32)
            if not spare_col:
                ones_col = jnp.ones((e2.shape[0], 1), bf16)
                colsum_ref[...] = jax.lax.dot_general(
                    e2, ones_col, dimension_numbers=A_TB, preferred_element_type=f32)

        meta_raw = meta_raw_ref[...]                                   # (S, Hp)
        if spare_col:
            # The packed 1.0 column of m made column H of meta_raw the column
            # sums; pull it out with a lane select + reduce (cheap, layout-safe).
            lane = jax.lax.broadcasted_iota(jnp.int32, meta_raw.shape, 1)
            col_sum = jnp.sum(jnp.where(lane == H, meta_raw, 0.0),
                              axis=1, keepdims=True)                   # (S, 1)
        else:
            col_sum = colsum_ref[...]
        meta_ctx = meta_raw / col_sum

        # ---- concat linear: cat([text_ctx, meta_ctx], 1) @ Wc + bc ----------
        tb = text_ctx.astype(bf16)
        mb = meta_ctx.astype(bf16)
        if fuse_concat:
            # One K = 2*Hp matmul (full depth on v6e/v7x 256-deep MXU).
            cat_ref[:, :Hp] = tb
            cat_ref[:, Hp:] = mb
            out = jnp.dot(cat_ref[...], wc_ref[...],
                          preferred_element_type=f32) + bc_ref[...]
        else:
            # v5e (128-deep MXU): two K = Hp matmuls, no extra copy.
            out = (jnp.dot(tb, wc_ref[:Hp, :], preferred_element_type=f32)
                   + jnp.dot(mb, wc_ref[Hp:, :], preferred_element_type=f32)
                   + bc_ref[...])
        out_ref[...] = out.astype(out_ref.dtype)

    return kernel


def co_attention(text_emb, meta_emb, params, *, fuse_concat=None):
    """text_emb, meta_emb: [S, H] float32.  params: dict of weights/biases,
    weights stored as [in, out] (i.e. PyTorch nn.Linear weight.T)."""
    S, H = text_emb.shape
    Hp = max(128, ((H + 127) // 128) * 128)         # lane-dense hidden dim
    spare_col = Hp > H                               # free padded lane for the col-sum trick

    if fuse_concat is None:
        kind = jax.devices()[0].device_kind.lower()
        # 256-deep MXU (v6e / v7x): fuse the concat linear; 128-deep (<= v5): keep split.
        fuse_concat = not any(v in kind for v in ("v2", "v3", "v4", "v5"))

    f32, bf16 = jnp.float32, jnp.bfloat16

    def pad2(x, rows, cols, dtype):
        x = jnp.pad(x, ((0, rows - x.shape[0]), (0, cols - x.shape[1])))
        return x.astype(dtype)

    t_p = pad2(text_emb, S, Hp, bf16)
    m_p = pad2(meta_emb, S, Hp, bf16)
    if spare_col:
        # Pack a 1.0 column into the padded meta values so the column-softmax
        # denominators fall out of the meta_ctx matmul for free (wm / wc rows
        # at this index are zero, so it cannot leak into the output).
        m_p = m_p.at[:, H].set(1.0)

    wt_p = pad2(params["wt"], Hp, Hp, bf16)
    wm_p = pad2(params["wm"], Hp, Hp, bf16)
    bt_p = pad2(params["bt"], 1, Hp, f32)
    bm_p = pad2(params["bm"], 1, Hp, f32)
    bc_p = pad2(params["bc"], 1, Hp, f32)
    wc = params["wc"]                                # (2H, H): [text rows; meta rows]
    wc_p = jnp.zeros((2 * Hp, Hp), f32)
    wc_p = wc_p.at[:H, :H].set(wc[:H])
    wc_p = wc_p.at[Hp:Hp + H, :H].set(wc[H:])
    wc_p = wc_p.astype(bf16)

    # Scoped-VMEM budget sized to the real working set, capped below physical
    # VMEM (leaves headroom; 64 MiB v7x vs 128 MiB v5e/v6e).
    est = 16 * S * S + 48 * S * Hp + 16 * Hp * Hp + (4 << 20)
    try:
        phys = int(pltpu.get_tpu_info().vmem_capacity_bytes)
    except Exception:
        phys = 64 << 20
    vmem_limit = int(min(phys - (8 << 20), max(32 << 20, est)))

    kernel = _make_kernel(H, Hp, spare_col, fuse_concat)
    vmem = pl.BlockSpec(memory_space=pltpu.MemorySpace.VMEM)
    out = pl.pallas_call(
        kernel,
        out_shape=jax.ShapeDtypeStruct((S, Hp), jnp.float32),
        in_specs=[vmem] * 8,
        out_specs=vmem,
        scratch_shapes=[
            pltpu.VMEM((S, Hp), jnp.float32),        # un-normalized meta context
            pltpu.VMEM((S, 1), jnp.float32),         # column sums (Hp == H path only)
            pltpu.VMEM((S, 2 * Hp), jnp.bfloat16),   # fused concat-linear input
        ],
        compiler_params=pltpu.CompilerParams(vmem_limit_bytes=vmem_limit),
    )(t_p, m_p, wt_p, bt_p, wm_p, bm_p, wc_p, bc_p)
    return out if Hp == H else out[:, :H]


def _reference(text_emb, meta_emb, params):
    """Pure-JAX f32 reference mirroring the PyTorch module exactly."""
    tq = text_emb @ params["wt"] + params["bt"]
    mq = meta_emb @ params["wm"] + params["bm"]
    affinity = tq @ mq.T
    text_att = jax.nn.softmax(affinity, axis=1)
    meta_att = jax.nn.softmax(affinity.T, axis=1)
    meta_ctx = meta_att @ meta_emb
    text_ctx = text_att @ text_emb
    cat = jnp.concatenate([text_ctx, meta_ctx], axis=1)
    return cat @ params["wc"] + params["bc"]


if __name__ == "__main__":
    S, H = 8, 32  # seq len (text and meta must match per the module), hidden size
    key = jax.random.PRNGKey(0)
    k = jax.random.split(key, 8)

    text_emb = jax.random.normal(k[0], (S, H), dtype=jnp.float32)
    meta_emb = jax.random.normal(k[1], (S, H), dtype=jnp.float32)

    scale = 1.0 / jnp.sqrt(H)
    params = {
        "wt": jax.random.uniform(k[2], (H, H), jnp.float32, -scale, scale),
        "bt": jax.random.uniform(k[3], (1, H), jnp.float32, -scale, scale),
        "wm": jax.random.uniform(k[4], (H, H), jnp.float32, -scale, scale),
        "bm": jax.random.uniform(k[5], (1, H), jnp.float32, -scale, scale),
        "wc": jax.random.uniform(k[6], (2 * H, H), jnp.float32,
                                 -scale / jnp.sqrt(2.0), scale / jnp.sqrt(2.0)),
        "bc": jax.random.uniform(k[7], (1, H), jnp.float32,
                                 -scale / jnp.sqrt(2.0), scale / jnp.sqrt(2.0)),
    }

    out = jax.block_until_ready(co_attention(text_emb, meta_emb, params))
    ref = _reference(text_emb, meta_emb, params)
    assert out.shape == (S, H)
    # bf16 MXU feeds loosen tolerance vs the f32 reference.
    assert jnp.allclose(out, ref, atol=2e-2, rtol=2e-2), "mismatch vs pure-JAX reference"

    # Exercise the guarded column-softmax fallback: scaled embeddings push the
    # affinity dynamic range far beyond 80, which would underflow the shared-exp
    # path (col_sum == 0 -> NaN) without the pl.when cold path.  Only finiteness
    # is asserted because bf16 logit quantization at this dynamic range makes a
    # tight comparison against the f32 reference meaningless.
    out_big = jax.block_until_ready(
        co_attention(text_emb * 30.0, meta_emb * 30.0, params))
    assert bool(jnp.all(jnp.isfinite(out_big))), "fallback path produced non-finite values"

    print("KERNEL_OK")
</pallas_src>

<mosaic_0001>
module attributes {stable_mosaic.version = 11 : i64} {
  func.func @kernel(%arg0: memref<8x128xbf16, #tpu.memory_space<vmem>>, %arg1: memref<8x128xbf16, #tpu.memory_space<vmem>>, %arg2: memref<128x128xbf16, #tpu.memory_space<vmem>>, %arg3: memref<1x128xf32, #tpu.memory_space<vmem>>, %arg4: memref<128x128xbf16, #tpu.memory_space<vmem>>, %arg5: memref<1x128xf32, #tpu.memory_space<vmem>>, %arg6: memref<256x128xbf16, #tpu.memory_space<vmem>>, %arg7: memref<1x128xf32, #tpu.memory_space<vmem>>, %arg8: memref<8x128xf32, #tpu.memory_space<vmem>>, %arg9: memref<8x128xf32, #tpu.memory_space<vmem>>, %arg10: memref<8x1xf32, #tpu.memory_space<vmem>>, %arg11: memref<8x256xbf16, #tpu.memory_space<vmem>>) attributes {dimension_semantics = [], scalar_prefetch = 0 : i64, scratch_operands = 3 : i64, tpu.core_type = #tpu.core_type<tc>} {
    %c0 = arith.constant 0 : index
    %c0_0 = arith.constant 0 : index
    %0 = vector.load %arg0[%c0, %c0_0] : memref<8x128xbf16, #tpu.memory_space<vmem>>, vector<8x128xbf16>
    %c0_1 = arith.constant 0 : index
    %c0_2 = arith.constant 0 : index
    %1 = vector.load %arg1[%c0_1, %c0_2] : memref<8x128xbf16, #tpu.memory_space<vmem>>, vector<8x128xbf16>
    %c0_3 = arith.constant 0 : index
    %c0_4 = arith.constant 0 : index
    %2 = vector.load %arg2[%c0_3, %c0_4] : memref<128x128xbf16, #tpu.memory_space<vmem>>, vector<128x128xbf16>
    %cst = arith.constant dense<0.000000e+00> : vector<8x128xf32>
    %3 = tpu.matmul %0, %2, %cst {dimension_numbers = #tpu.dot_dimension_numbers<[1], [0], [0], [1], [0, 0, 1, 1], [], []>} : vector<8x128xbf16>, vector<128x128xbf16>, vector<8x128xf32> -> vector<8x128xf32>
    %c0_5 = arith.constant 0 : index
    %c0_6 = arith.constant 0 : index
    %4 = vector.load %arg3[%c0_5, %c0_6] : memref<1x128xf32, #tpu.memory_space<vmem>>, vector<1x128xf32>
    %5 = vector.broadcast %4 : vector<1x128xf32> to vector<8x128xf32>
    %6 = arith.addf %3, %5 : vector<8x128xf32>
    %c0_7 = arith.constant 0 : index
    %c0_8 = arith.constant 0 : index
    %7 = vector.load %arg4[%c0_7, %c0_8] : memref<128x128xbf16, #tpu.memory_space<vmem>>, vector<128x128xbf16>
    %cst_9 = arith.constant dense<0.000000e+00> : vector<8x128xf32>
    %8 = tpu.matmul %1, %7, %cst_9 {dimension_numbers = #tpu.dot_dimension_numbers<[1], [0], [0], [1], [0, 0, 1, 1], [], []>} : vector<8x128xbf16>, vector<128x128xbf16>, vector<8x128xf32> -> vector<8x128xf32>
    %c0_10 = arith.constant 0 : index
    %c0_11 = arith.constant 0 : index
    %9 = vector.load %arg5[%c0_10, %c0_11] : memref<1x128xf32, #tpu.memory_space<vmem>>, vector<1x128xf32>
    %10 = vector.broadcast %9 : vector<1x128xf32> to vector<8x128xf32>
    %11 = arith.addf %8, %10 : vector<8x128xf32>
    %12 = arith.truncf %6 : vector<8x128xf32> to vector<8x128xbf16>
    %13 = arith.truncf %11 : vector<8x128xf32> to vector<8x128xbf16>
    %cst_12 = arith.constant dense<0.000000e+00> : vector<8x8xf32>
    %14 = tpu.matmul %12, %13, %cst_12 {dimension_numbers = #tpu.dot_dimension_numbers<[1], [1], [0], [0], [0, 0, 1, 0], [], []>} : vector<8x128xbf16>, vector<8x128xbf16>, vector<8x8xf32> -> vector<8x8xf32>
    %cst_13 = arith.constant dense<0xFF800000> : vector<8xf32>
    %15 = vector.multi_reduction <maximumf>, %14, %cst_13 [1] : vector<8x8xf32> to vector<8xf32>
    %16 = vector.shape_cast %15 : vector<8xf32> to vector<8x1xf32>
    %17 = vector.broadcast %16 : vector<8x1xf32> to vector<8x8xf32>
    %18 = arith.subf %14, %17 : vector<8x8xf32>
    %19 = math.exp %18 : vector<8x8xf32>
    %20 = arith.truncf %19 : vector<8x8xf32> to vector<8x8xbf16>
    %cst_14 = arith.constant dense<0.000000e+00> : vector<8xf32>
    %21 = vector.multi_reduction <add>, %19, %cst_14 [1] : vector<8x8xf32> to vector<8xf32>
    %22 = vector.shape_cast %21 : vector<8xf32> to vector<8x1xf32>
    %cst_15 = arith.constant dense<0.000000e+00> : vector<8x128xf32>
    %23 = tpu.matmul %20, %0, %cst_15 {dimension_numbers = #tpu.dot_dimension_numbers<[1], [0], [0], [1], [0, 0, 1, 1], [], []>} : vector<8x8xbf16>, vector<8x128xbf16>, vector<8x128xf32> -> vector<8x128xf32>
    %24 = vector.broadcast %22 : vector<8x1xf32> to vector<8x128xf32>
    %25 = arith.divf %23, %24 : vector<8x128xf32>
    %cst_16 = arith.constant dense<0xFF800000> : vector<1xf32>
    %26 = vector.multi_reduction <maximumf>, %16, %cst_16 [0] : vector<8x1xf32> to vector<1xf32>
    %27 = vector.shape_cast %26 : vector<1xf32> to vector<1x1xf32>
    %28 = vector.broadcast %27 : vector<1x1xf32> to vector<8x1xf32>
    %29 = arith.subf %16, %28 : vector<8x1xf32>
    %30 = math.exp %29 : vector<8x1xf32>
    %cst_17 = arith.constant dense<0xFF800000> : vector<8xf32>
    %31 = vector.multi_reduction <maximumf>, %14, %cst_17 [0] : vector<8x8xf32> to vector<8xf32>
    %32 = vector.shape_cast %31 : vector<8xf32> to vector<1x8xf32>
    %cst_18 = arith.constant dense<0x7F800000> : vector<1xf32>
    %33 = vector.multi_reduction <minimumf>, %32, %cst_18 [1] : vector<1x8xf32> to vector<1xf32>
    %34 = vector.shape_cast %33 : vector<1xf32> to vector<1x1xf32>
    %35 = arith.subf %27, %34 : vector<1x1xf32>
    %36 = vector.extract %35[0, 0] : f32 from vector<1x1xf32>
    %cst_19 = arith.constant 8.000000e+01 : f32
    %37 = arith.cmpf ogt, %36, %cst_19 : f32
    %true = arith.constant true
    %38 = arith.xori %37, %true : i1
    %39 = arith.extui %38 : i1 to i32
    %c0_i32 = arith.constant 0 : i32
    %40 = arith.cmpi ne, %39, %c0_i32 : i32
    scf.if %40 {
      %64 = arith.extf %1 : vector<8x128xbf16> to vector<8x128xf32>
      %65 = vector.broadcast %30 : vector<8x1xf32> to vector<8x128xf32>
      %66 = arith.mulf %64, %65 : vector<8x128xf32>
      %67 = arith.truncf %66 : vector<8x128xf32> to vector<8x128xbf16>
      %cst_37 = arith.constant dense<0.000000e+00> : vector<8x128xf32>
      %68 = tpu.matmul %20, %67, %cst_37 {dimension_numbers = #tpu.dot_dimension_numbers<[0], [0], [1], [1], [0, 1, 1, 1], [], []>} : vector<8x8xbf16>, vector<8x128xbf16>, vector<8x128xf32> -> vector<8x128xf32>
      %c0_38 = arith.constant 0 : index
      %c0_39 = arith.constant 0 : index
      %69 = vector.load %arg9[%c0_38, %c0_39] : memref<8x128xf32, #tpu.memory_space<vmem>>, vector<8x128xf32>
      tpu.vector_store %arg9[%c0_38, %c0_39], %68 {strides = array<i32>} : memref<8x128xf32, #tpu.memory_space<vmem>>, vector<8x128xf32>,
    } else {
    }
    %41 = arith.extui %37 : i1 to i32
    %c0_i32_20 = arith.constant 0 : i32
    %42 = arith.cmpi ne, %41, %c0_i32_20 : i32
    scf.if %42 {
      %64 = vector.broadcast %32 : vector<1x8xf32> to vector<8x8xf32>
      %65 = arith.subf %14, %64 : vector<8x8xf32>
      %66 = math.exp %65 : vector<8x8xf32>
      %67 = arith.truncf %66 : vector<8x8xf32> to vector<8x8xbf16>
      %cst_37 = arith.constant dense<0.000000e+00> : vector<8x128xf32>
      %68 = tpu.matmul %67, %1, %cst_37 {dimension_numbers = #tpu.dot_dimension_numbers<[0], [0], [1], [1], [0, 1, 1, 1], [], []>} : vector<8x8xbf16>, vector<8x128xbf16>, vector<8x128xf32> -> vector<8x128xf32>
      %c0_38 = arith.constant 0 : index
      %c0_39 = arith.constant 0 : index
      %69 = vector.load %arg9[%c0_38, %c0_39] : memref<8x128xf32, #tpu.memory_space<vmem>>, vector<8x128xf32>
      tpu.vector_store %arg9[%c0_38, %c0_39], %68 {strides = array<i32>} : memref<8x128xf32, #tpu.memory_space<vmem>>, vector<8x128xf32>,
    } else {
    }
    %c0_21 = arith.constant 0 : index
    %c0_22 = arith.constant 0 : index
    %43 = vector.load %arg9[%c0_21, %c0_22] : memref<8x128xf32, #tpu.memory_space<vmem>>, vector<8x128xf32>
    %44 = tpu.iota {dimensions = array<i32: 1>} : vector<8x128xi32>
    %c32_i32 = arith.constant 32 : i32
    %45 = vector.broadcast %c32_i32 : i32 to vector<8x128xi32>
    %46 = arith.cmpi eq, %44, %45 : vector<8x128xi32>
    %cst_23 = arith.constant 0.000000e+00 : f32
    %47 = vector.broadcast %cst_23 : f32 to vector<8x128xf32>
    %48 = arith.select %46, %43, %47 : vector<8x128xi1>, vector<8x128xf32>
    %cst_24 = arith.constant dense<0.000000e+00> : vector<8xf32>
    %49 = vector.multi_reduction <add>, %48, %cst_24 [1] : vector<8x128xf32> to vector<8xf32>
    %50 = vector.shape_cast %49 : vector<8xf32> to vector<8x1xf32>
    %51 = vector.broadcast %50 : vector<8x1xf32> to vector<8x128xf32>
    %52 = arith.divf %43, %51 : vector<8x128xf32>
    %53 = arith.truncf %25 : vector<8x128xf32> to vector<8x128xbf16>
    %54 = arith.truncf %52 : vector<8x128xf32> to vector<8x128xbf16>
    %c0_25 = arith.constant 0 : index
    %c0_26 = arith.constant 0 : index
    %55 = vector.load %arg11[%c0_25, %c0_26] : memref<8x256xbf16, #tpu.memory_space<vmem>>, vector<8x128xbf16>
    tpu.vector_store %arg11[%c0_25, %c0_26], %53 {strides = array<i32>} : memref<8x256xbf16, #tpu.memory_space<vmem>>, vector<8x128xbf16>,
    %c0_27 = arith.constant 0 : index
    %c128 = arith.constant 128 : index
    %56 = vector.load %arg11[%c0_27, %c128] : memref<8x256xbf16, #tpu.memory_space<vmem>>, vector<8x128xbf16>
    tpu.vector_store %arg11[%c0_27, %c128], %54 {strides = array<i32>} : memref<8x256xbf16, #tpu.memory_space<vmem>>, vector<8x128xbf16>,
    %c0_28 = arith.constant 0 : index
    %c0_29 = arith.constant 0 : index
    %57 = vector.load %arg11[%c0_28, %c0_29] : memref<8x256xbf16, #tpu.memory_space<vmem>>, vector<8x256xbf16>
    %c0_30 = arith.constant 0 : index
    %c0_31 = arith.constant 0 : index
    %58 = vector.load %arg6[%c0_30, %c0_31] : memref<256x128xbf16, #tpu.memory_space<vmem>>, vector<256x128xbf16>
    %cst_32 = arith.constant dense<0.000000e+00> : vector<8x128xf32>
    %59 = tpu.matmul %57, %58, %cst_32 {dimension_numbers = #tpu.dot_dimension_numbers<[1], [0], [0], [1], [0, 0, 1, 1], [], []>} : vector<8x256xbf16>, vector<256x128xbf16>, vector<8x128xf32> -> vector<8x128xf32>
    %c0_33 = arith.constant 0 : index
    %c0_34 = arith.constant 0 : index
    %60 = vector.load %arg7[%c0_33, %c0_34] : memref<1x128xf32, #tpu.memory_space<vmem>>, vector<1x128xf32>
    %61 = vector.broadcast %60 : vector<1x128xf32> to vector<8x128xf32>
    %62 = arith.addf %59, %61 : vector<8x128xf32>
    %c0_35 = arith.constant 0 : index
    %c0_36 = arith.constant 0 : index
    %63 = vector.load %arg8[%c0_35, %c0_36] : memref<8x128xf32, #tpu.memory_space<vmem>>, vector<8x128xf32>
    tpu.vector_store %arg8[%c0_35, %c0_36], %62 {strides = array<i32>} : memref<8x128xf32, #tpu.memory_space<vmem>>, vector<8x128xf32>,
    return
  }
}

</mosaic_0001>

<bundles_post_ra>
// kernel: tpu_custom_call.1
= control target key start
LH: loop header
LB: loop body
LE: loop exit
PB: predicated region body
PF: predicated region fallthrough
CT: control target
= control target key end

     0   :  { %13 = vsyncpa [#allocation6], 0  ;;  %s1332_s0 = inlined_call_operand.hbm [shape: bf16[8,128], index: 0, kind: input, shape index: {}]   ;;  %s1333_s1 = inlined_call_operand.hbm [shape: bf16[8,128], index: 1, kind: input, shape index: {}]   ;;  %s1334_s2 = inlined_call_operand.hbm [shape: bf16[128,128], index: 2, kind: input, shape index: {}]   ;;  %s1335_s3 = inlined_call_operand.vmem [shape: f32[1,128], index: 3, kind: input, shape index: {}]   ;;  %s1336_s4 = inlined_call_operand.hbm [shape: bf16[128,128], index: 4, kind: input, shape index: {}]   ;;  %s1337_s5 = inlined_call_operand.vmem [shape: f32[1,128], index: 5, kind: input, shape index: {}]   ;;  %s1338_s6 = inlined_call_operand.hbm [shape: bf16[256,128], index: 6, kind: input, shape index: {}]   ;;  %s1339_s7 = inlined_call_operand.vmem [shape: f32[1,128], index: 7, kind: input, shape index: {}]   ;;  %s1340_s8 = inlined_call_operand.hbm [shape: f32[8,128], index: 8, kind: output, shape index: {}]  }
   0x1   :  { %14 = vsyncpa [#allocation9], 0 }
   0x2   :  { %15 = vsyncpa [#allocation12], 0 }
   0x3   :  { %16 = vsyncpa [#allocation7], 0  ;;  %s1154_s27 = smov [#allocation8]   ;;  %s1014_s9 = scalar_lea.hbm %s1333_s1, 64 }
   0x4   :  { %s33_s28 = sshll.u32 %s1154_s27, 4  ;;  %p1015_p0 = scmp.ne.s32.totalorder %s1333_s1, %s1014_s9  ;;  %s34_s28 = int_to_ptr.vmem [resolvable:$true] %s33_s28 }
   0x5   :  { %p1018_p1 = scmp.lt.u32.totalorder %s1014_s9, %s1333_s1 }
   0x7   :  { %p1020_p2 = pnand %p1018_p1, %p1015_p0 }
   0x9   :  { %1023 = shalt.err (!%p1020_p2)
}
   0xa   :  { %s1024_s14 = scalar_lea.vmem %s34_s28, 64  ;;  %p1029_p4 = scmp.lt.s32.totalorder %s34_s28, %s34_s28 }
   0xb   :  { %p1025_p3 = scmp.ne.s32.totalorder %s34_s28, %s1024_s14  ;;  %p1030_p5 = scmp.lt.s32.totalorder %s1024_s14, %s1024_s14 }
   0xd   :  { %p1031_p6 = por %p1030_p5, %p1029_p4 }
   0xf   :  { %p1032_p7 = pnand %p1031_p6, %p1025_p3 }
  0x11   :  { %1035 = shalt.err (!%p1032_p7)
}
  0x12   :  { %36 = dma.hbm_to_vmem [thread:$0]  %s1333_s1, 64, %s34_s28, [#allocation9]  }
  0x13   :  { %s1155_s17 = smov [#allocation11]   ;;  %s1156_s19 = smov [#allocation5]  }
  0x14   :  { %s56_s18 = sshll.u32 %s1155_s17, 4  ;;  %s23_s20 = sshll.u32 %s1156_s19, 4  ;;  %s57_s18 = int_to_ptr.vmem [resolvable:$true] %s56_s18  ;;  %s24_s20 = int_to_ptr.vmem [resolvable:$true] %s23_s20 }
  0x15   :  { %s1036_s23 = scalar_lea.hbm %s1336_s4, 1024 }
  0x16   :  { %p1037_p8 = scmp.ne.s32.totalorder %s1336_s4, %s1036_s23  ;;  %p1040_p9 = scmp.lt.u32.totalorder %s1036_s23, %s1336_s4 }
  0x18   :  { %p1042_p10 = pnand %p1040_p9, %p1037_p8 }
  0x1a   :  { %1045 = shalt.err (!%p1042_p10)
}
  0x1b   :  { %s1046_s1 = scalar_lea.vmem %s57_s18, 1024  ;;  %p1051_p12 = scmp.lt.s32.totalorder %s57_s18, %s57_s18 }
  0x1c   :  { %p1047_p11 = scmp.ne.s32.totalorder %s57_s18, %s1046_s1  ;;  %p1052_p13 = scmp.lt.s32.totalorder %s1046_s1, %s1046_s1 }
  0x1e   :  { %p1053_p0 = por %p1052_p13, %p1051_p12 }
  0x20   :  { %p1054_p1 = pnand %p1053_p0, %p1047_p11 }
  0x22   :  { %1057 = shalt.err (!%p1054_p1)
}
  0x23   :  { %s1157_s28 = smov 64   ;;  %s1158_s29 = smov 4  }
  0x24   :  { %62 = dma.hbm_to_vmem [thread:$0]  %s1336_s4, 1024, %s57_s18, [#allocation12], %s1157_s28, %s1157_s28, %s1158_s29  }
  0x25   :  { %s1058_s12 = scalar_lea.hbm %s1332_s0, 64 }
  0x26   :  { %p1059_p2 = scmp.ne.s32.totalorder %s1332_s0, %s1058_s12  ;;  %p1062_p3 = scmp.lt.u32.totalorder %s1058_s12, %s1332_s0 }
  0x28   :  { %p1064_p4 = pnand %p1062_p3, %p1059_p2 }
  0x2a   :  { %1067 = shalt.err (!%p1064_p4)
}
  0x2b   :  { %s1068_s17 = scalar_lea.vmem %s24_s20, 64  ;;  %p1073_p6 = scmp.lt.s32.totalorder %s24_s20, %s24_s20 }
  0x2c   :  { %p1069_p5 = scmp.ne.s32.totalorder %s24_s20, %s1068_s17  ;;  %p1074_p7 = scmp.lt.s32.totalorder %s1068_s17, %s1068_s17 }
  0x2e   :  { %p1075_p8 = por %p1074_p7, %p1073_p6 }
  0x30   :  { %p1076_p9 = pnand %p1075_p8, %p1069_p5 }
  0x32   :  { %1079 = shalt.err (!%p1076_p9)
}
  0x33   :  { %26 = dma.hbm_to_vmem [thread:$0]  %s1332_s0, 64, %s24_s20, [#allocation6]  }
  0x34   :  { %s1159_s19 = smov [#allocation10]   ;;  %s1160_s22 = smov [#allocation13]  }
  0x35   :  { %s42_s21 = sshll.u32 %s1159_s19, 4  ;;  %s70_s23 = sshll.u32 %s1160_s22, 4  ;;  %s43_s21 = int_to_ptr.vmem [resolvable:$true] %s42_s21  ;;  %s71_s23 = int_to_ptr.vmem [resolvable:$true] %s70_s23 }
  0x36   :  { %s1080_s26 = scalar_lea.hbm %s1334_s2, 1024 }
  0x37   :  { %p1081_p10 = scmp.ne.s32.totalorder %s1334_s2, %s1080_s26  ;;  %p1084_p11 = scmp.lt.u32.totalorder %s1080_s26, %s1334_s2 }
  0x39   :  { %p1086_p12 = pnand %p1084_p11, %p1081_p10 }
  0x3b   :  { %1089 = shalt.err (!%p1086_p12)
}
  0x3c   :  { %s1090_s0 = scalar_lea.vmem %s43_s21, 1024  ;;  %p1095_p0 = scmp.lt.s32.totalorder %s43_s21, %s43_s21 }
  0x3d   :  { %p1091_p13 = scmp.ne.s32.totalorder %s43_s21, %s1090_s0  ;;  %p1096_p1 = scmp.lt.s32.totalorder %s1090_s0, %s1090_s0 }
  0x3f   :  { %p1097_p2 = por %p1096_p1, %p1095_p0 }
  0x41   :  { %p1098_p3 = pnand %p1097_p2, %p1091_p13 }
  0x43   :  { %1101 = shalt.err (!%p1098_p3)
}
  0x44   :  { %48 = dma.hbm_to_vmem [thread:$0]  %s1334_s2, 1024, %s43_s21, [#allocation9], %s1157_s28, %s1157_s28, %s1158_s29  }
  0x45   :  { %s1102_s13 = scalar_lea.hbm %s1338_s6, 2048 }
  0x46   :  { %p1103_p4 = scmp.ne.s32.totalorder %s1338_s6, %s1102_s13  ;;  %p1106_p5 = scmp.lt.u32.totalorder %s1102_s13, %s1338_s6 }
  0x48   :  { %p1108_p6 = pnand %p1106_p5, %p1103_p4 }
  0x4a   :  { %1111 = shalt.err (!%p1108_p6)
}
  0x4b   :  { %s1112_s4 = scalar_lea.vmem %s71_s23, 2048  ;;  %p1117_p8 = scmp.lt.s32.totalorder %s71_s23, %s71_s23 }
  0x4c   :  { %p1113_p7 = scmp.ne.s32.totalorder %s71_s23, %s1112_s4  ;;  %p1118_p9 = scmp.lt.s32.totalorder %s1112_s4, %s1112_s4 }
  0x4e   :  { %p1119_p10 = por %p1118_p9, %p1117_p8 }
  0x50   :  { %p1120_p11 = pnand %p1119_p10, %p1113_p7 }
  0x52   :  { %1123 = shalt.err (!%p1120_p11)
}
  0x53   :  { %76 = dma.hbm_to_vmem [thread:$0]  %s1338_s6, 2048, %s71_s23, [#allocation12], %s1157_s28, %s1157_s28, %s1158_s29  }
  0x54   :  { %1146 = dma.done.wait [#allocation6], 64  }
  0x55   :  { %1147 = vsyncadd [#allocation6], 4294967232 }
  0x56   :  { %1148 = dma.done.wait [#allocation9], 1088  }
  0x57   :  { %1149 = vsyncadd [#allocation9], 4294966208 }
  0x58   :  { %1150 = dma.done.wait [#allocation12], 3072  }
  0x59   :  { %1151 = vsyncadd [#allocation12], 4294964224  ;;  %v1161_v0 = vmov 0.0   ;;  %vm1162_vm0 = vmmov 0   ;;  %v972_v1 = vld [vmem:[#allocation11] sm:$0xff]   ;;  %v973_v2 = vld [vmem:[#allocation11 + $0x8] sm:$0xff]  }
  0x5a   :  { %910 = vmatprep.subr.bf16.mxu1 %v1161_v0  ;;  %890 = vmatprep.subr.bf16.mxu0 %v1161_v0  ;;  %v974_v3 = vld [vmem:[#allocation10] sm:$0xff]   ;;  %v976_v4 = vld [vmem:[#allocation10 + $0x8] sm:$0xff]   ;;  %v975_v5 = vld [vmem:[#allocation11 + $0x10] sm:$0xff]   ;;  %vm375_vm1 = vcmask 1043456   ;;  %vm361_vm2 = vcmask 64512  }
  0x5b   :  { %926 = vmatprep.mubr.msk.bf16.mxu1 %vm1162_vm0, %v1161_v0  ;;  %906 = vmatprep.mubr.msk.bf16.mxu0 %vm1162_vm0, %v1161_v0  ;;  %v978_v6 = vld [vmem:[#allocation10 + $0x10] sm:$0xff]   ;;  %v977_v7 = vld [vmem:[#allocation11 + $0x18] sm:$0xff]   ;;  %v979_v9 = vld [vmem:[#allocation11 + $0x20] sm:$0xff]  }
  0x5c   :  { %911 = vmatpush3.bf16.msra.mxu1 %v972_v1  ;;  %891 = vmatpush3.bf16.msra.mxu0 %v974_v3  ;;  %v980_v8 = vld [vmem:[#allocation10 + $0x18] sm:$0xff]   ;;  %v982_v10 = vld [vmem:[#allocation10 + $0x20] sm:$0xff]   ;;  %v981_v11 = vld [vmem:[#allocation11 + $0x28] sm:$0xff]  }
  0x5d   :  { %912 = vmatprep.subr.bf16.mxu1 %v1161_v0  ;;  %892 = vmatprep.subr.bf16.mxu0 %v1161_v0  ;;  %v984_v12 = vld [vmem:[#allocation10 + $0x28] sm:$0xff]   ;;  %v983_v13 = vld [vmem:[#allocation11 + $0x30] sm:$0xff]   ;;  %v985_v15 = vld [vmem:[#allocation11 + $0x38] sm:$0xff]  }
  0x5e   :  { %v986_v14 = vld [vmem:[#allocation10 + $0x30] sm:$0xff]   ;;  %v987_v16 = vld [vmem:[#allocation10 + $0x38] sm:$0xff]  }
  0x5f   :  { %v1284_v17 = vld [vmem:[#allocation8] sm:$0xf]  ;;  %v95_v18 = vld [vmem:[#allocation5] sm:$0xf]  ;;  %v804_v20 = vld [vmem:[%s1337_s5] ss:$0 sm:$0xff] }
  0x60   :  { %913 = vmatpush3.bf16.msra.mxu1 %v973_v2  ;;  %893 = vmatpush3.bf16.msra.mxu0 %v976_v4  ;;  %v377_v19 = vsel %vm375_vm1, %v95_v18, 0  ;;  %v795_v24 = vld [vmem:[%s1335_s3] ss:$0 sm:$0xff] }
  0x61   :  { %914 = vmatprep.subr.bf16.mxu1 %v1161_v0  ;;  %894 = vmatprep.subr.bf16.mxu0 %v1161_v0 }
  0x64   :  { %915 = vmatpush3.bf16.msra.mxu1 %v975_v5  ;;  %895 = vmatpush3.bf16.msra.mxu0 %v978_v6 }
  0x65   :  { %916 = vmatprep.subr.bf16.mxu1 %v1161_v0  ;;  %896 = vmatprep.subr.bf16.mxu0 %v1161_v0 }
  0x68   :  { %917 = vmatpush3.bf16.msra.mxu1 %v977_v7  ;;  %897 = vmatpush3.bf16.msra.mxu0 %v980_v8 }
  0x69   :  { %918 = vmatprep.subr.bf16.mxu1 %v1161_v0  ;;  %898 = vmatprep.subr.bf16.mxu0 %v1161_v0 }
  0x6c   :  { %919 = vmatpush3.bf16.msra.mxu1 %v979_v9  ;;  %899 = vmatpush3.bf16.msra.mxu0 %v982_v10 }
  0x6d   :  { %920 = vmatprep.subr.bf16.mxu1 %v1161_v0  ;;  %900 = vmatprep.subr.bf16.mxu0 %v1161_v0 }
  0x70   :  { %921 = vmatpush3.bf16.msra.mxu1 %v981_v11  ;;  %901 = vmatpush3.bf16.msra.mxu0 %v984_v12 }
  0x71   :  { %922 = vmatprep.subr.bf16.mxu1 %v1161_v0  ;;  %902 = vmatprep.subr.bf16.mxu0 %v1161_v0 }
  0x74   :  { %923 = vmatpush3.bf16.msra.mxu1 %v983_v13  ;;  %903 = vmatpush3.bf16.msra.mxu0 %v986_v14 }
  0x75   :  { %924 = vmatprep.subr.bf16.mxu1 %v1161_v0  ;;  %904 = vmatprep.subr.bf16.mxu0 %v1161_v0 }
  0x78   :  { %925 = vmatpush3.bf16.msra.mxu1 %v985_v15  ;;  %905 = vmatpush3.bf16.msra.mxu0 %v987_v16 }
  0x79   :  { %936 = vmatprep.subr.bf16.mxu1 %v1161_v0  ;;  %930 = vmatprep.subr.bf16.mxu0 %v1161_v0 }
  0x7b   :  { %927 = vmatmul.mubr.bf16.vlgmr.msra.gmra.mrb[0].mxu1 %v1284_v17  ;;  %907 = vmatmul.mubr.bf16.vlgmr.msra.gmra.mrb[0].mxu0 %v95_v18 }
  0x7c   :  { %937 = vmatpush3.bf16.msra.mxu1 %v377_v19  ;;  %938 = vmatprep.mubr.msk.bf16.mxu1 %vm1162_vm0, %v1161_v0 }
  0x7d   :  { %932 = vmatprep.mubr.msk.bf16.mxu0 %vm1162_vm0, %v1161_v0 }
 0x14e   :  { %v313_v21 = vpop.f32.mrb[0].mxu1  ;;  %v202_v26 = vpop.f32.mrb[0].mxu0 }
 0x14f   :  { %v314_v22 = vadd.f32 %v804_v20, %v313_v21  ;;  %v928_v23 = vpop.f32.mrb[1].mxu1  ;;  %v908_v29 = vpop.f32.mrb[1].mxu0  ;;  %v203_v30 = vadd.f32 %v795_v24, %v202_v26 }
 0x150   :  { %v316_v25 = vpop.f32.mrb[2].mxu1  ;;  %v205_v31 = vpop.f32.mrb[2].mxu0 }
 0x151   :  { %v320_v27 = vpack.c.bf16 %v314_v22, %v314_v22  ;;  %v929_v28 = vpop.f32.mrb[3].mxu1  ;;  %v909_v32 = vpop.f32.mrb[3].mxu0  ;;  %v319_v33 = vpack.c.bf16 %v203_v30, %v203_v30 }
 0x153   :  { %931 = vmatpush3.bf16.xpose.msra.mxu0 %v320_v27 }
 0x15a   :  { %933 = vmatmul.mubr.bf16.vlgmr.msra.gmra.mrb[4].mxu0 %v319_v33 }
 0x22d   :  { %v355_v34 = vpop.f32.mrb[4].mxu0 }
 0x22e   :  { %v934_v35 = vpop.f32.mrb[5].mxu0  ;;  %v362_v36 = vsel %vm361_vm2, %v355_v34, -inf }
 0x22f   :  { %363 = vmax.xlane.f32.xlu0 %v362_v36  ;;  %v430_v37 = vrot.slane %v362_v36, 4  ;;  %v358_v38 = vpop.f32.mrb[6].mxu0 }
 0x230   :  { %v935_v39 = vpop.f32.mrb[7].mxu0 }
 0x231   :  { %v431_v40 = vmax.f32 %v362_v36, %v430_v37 }
 0x233   :  { %v432_v41 = vrot.slane %v431_v40, 2 }
 0x235   :  { %v433_v42 = vmax.f32 %v431_v40, %v432_v41 }
 0x237   :  { %v434_v43 = vrot.slane %v433_v42, 1 }
 0x239   :  { %v435_v44 = vmax.f32 %v433_v42, %v434_v43 }
 0x23b   :  { %v436_v45 = vsel %vm361_vm2, %v435_v44, inf }
 0x23c   :  { %437 = vmin.xlane.f32.xlu0 %v436_v45 }
 0x2bc   :  { %v364_v46 = vpop.xlane.xlu0 %363 }
 0x2bd   :  { %v365_v47 = vsub.f32 %v355_v34, %v364_v46  ;;  %v421_v48 = vrot.slane %v364_v46, 4 }
 0x2bf   :  { %v366_v49 = vmul.f32 1.442695, %v365_v47  ;;  %v422_v50 = vmax.f32 %v364_v46, %v421_v48 }
 0x2c1   :  { %988 = vpow2.f32 %v366_v49  ;;  %v423_v51 = vrot.slane %v422_v50, 2 }
 0x2c3   :  { %v424_v52 = vmax.f32 %v422_v50, %v423_v51 }
 0x2c5   :  { %v425_v53 = vrot.slane %v424_v52, 1 }
 0x2c7   :  { %v426_v54 = vmax.f32 %v424_v52, %v425_v53 }
 0x2c9   :  { %v438_v55 = vpop.xlane.xlu0 %437  ;;  %v427_v56 = vsub.f32 %v364_v46, %v426_v54 }
 0x2ca   :  { %v439_v57 = vsub.f32 %v426_v54, %v438_v55 }
 0x2cb   :  { %v989_v58 = vpop.eup %988  ;;  %v428_v59 = vmul.f32 1.442695, %v427_v56 }
 0x2cc   :  { %954 = vpush %v439_v57  ;;  %v369_v60 = vsel %vm361_vm2, %v989_v58, 0.0  ;;  %v368_v61 = vpack.c.bf16 %v989_v58, %v989_v58 }
 0x2cd   :  { %990 = vpow2.f32 %v428_v59  ;;  %370 = vadd.xlane.f32.xlu1 %v369_v60 }
 0x2ce   :  { %939 = vmatmul.mubr.msk.bf16.vlgmr.msra.gmra.mrb[4].mxu1 %vm361_vm2, %v368_v61 }
 0x2d7   :  { %v991_v62 = vpop.eup %990 }
 0x2fd   :  { %s1300_s3 = spop %954 }
 0x2fe   :  { %p441_p12 = scmp.gt.f32.partialorder %s1300_s3, 80.0 }
 0x2ff   :  { %v445_v6 = vsub.f32 (%p441_p12), %v355_v34, %v435_v44  ;;  %v469_v7 = vsel (%p441_p12), %vm375_vm1, %v1284_v17, 0  ;;  %v1163_v8 = vmov (%p441_p12), 0.0   ;;  %vm1164_vm3 = vmmov (%p441_p12), 0  }
 0x300   :  { %942 = vmatprep.subr.bf16.mxu0 (%p441_p12), %v1163_v8  ;;  %944 = vmatprep.mubr.msk.bf16.mxu0 (%p441_p12), %vm1164_vm3, %v1163_v8 }
 0x301   :  { %v446_v9 = vmul.f32 (%p441_p12), 1.442695, %v445_v6  ;;  %943 = vmatpush3.bf16.msra.mxu0 (%p441_p12), %v469_v7 }
 0x35a   :  { %v371_v63 = vpop.xlane.xlu1 %370 }
 0x35b   :  { %992 = vrcp.f32 %v371_v63 }
 0x35c   :  { %994 = vpow2.f32 (%p441_p12), %v446_v9 }
 0x365   :  { %v993_v0 = vpop.eup %992 }
 0x366   :  { %v995_v10 = vpop.eup (%p441_p12), %994 }
 0x367   :  { %v448_v11 = vpack.c.bf16 (%p441_p12), %v995_v10, %v995_v10 }
 0x369   :  { %449 = vxpose.xlu0.c.b16.start.end [1/1] (short) (narrow) (%p441_p12), %v448_v11, 16 }
 0x39e   :  { %444 = sbr.rel (!%p441_p12) target bundleno = 1191 (0x4a7), region = 57 }
 0x3a1   :  { %v413_v1 = vpop.f32.mrb[4].mxu1 }
 0x3a2   :  { %v1303_v2 = vmul.f32 %v993_v0, %v413_v1  ;;  %v940_v3 = vpop.f32.mrb[5].mxu1 }
 0x3a3   :  { %v416_v4 = vpop.f32.mrb[6].mxu1 }
 0x3a4   :  { %v941_v5 = vpop.f32.mrb[7].mxu1 }
 0x3cf   :  { %v457_v12 = vpop.trf.xlu0 }
 0x3d0   :  { %945 = vmatmul.mubr.msk.bf16.vlgmr.msra.gmra.mrb[0].mxu0 %vm361_vm2, %v457_v12 }
 0x4a3   :  { %v505_v13 = vpop.f32.mrb[0].mxu0 }
 0x4a4   :  { %511 = vst [vmem:[#allocation2] sm:$0xff] %v505_v13  ;;  %v946_v14 = vpop.f32.mrb[1].mxu0 }
 0x4a5   :  { %v508_v15 = vpop.f32.mrb[2].mxu0 }
 0x4a6   :  { %v947_v16 = vpop.f32.mrb[3].mxu0 }
 0x4a7 PF:  { %514 = sbr.rel (%p441_p12) target bundleno = 1509 (0x5e5), region = 61  ;;  %518 = vxpose.xlu0.c.b16.start.end [1/1] (short) (narrow) (!%p441_p12), %v368_v61, 16  ;;  %v515_v18 = vunpack.c.l.bf16 (!%p441_p12), %v1284_v17  ;;  %v1165_v19 = vmov (!%p441_p12), 0.0   ;;  %vm1166_vm4 = vmmov (!%p441_p12), 0  }
 0x4a8   :  { %948 = vmatprep.subr.bf16.mxu0 (!%p441_p12), %v1165_v19  ;;  %950 = vmatprep.mubr.msk.bf16.mxu0 (!%p441_p12), %vm1166_vm4, %v1165_v19 }
 0x4a9   :  { %v516_v20 = vmul.f32 (!%p441_p12), %v991_v62, %v515_v18 }
 0x4ab   :  { %v517_v21 = vpack.c.bf16 (!%p441_p12), %v516_v20, %v516_v20 }
 0x4ad   :  { %v538_v22 = vsel (!%p441_p12), %vm375_vm1, %v517_v21, 0 }
 0x4ae   :  { %949 = vmatpush3.bf16.msra.mxu0 %v538_v22 }
 0x50d   :  { %v526_v23 = vpop.trf.xlu0 }
 0x50e   :  { %951 = vmatmul.mubr.msk.bf16.vlgmr.msra.gmra.mrb[0].mxu0 %vm361_vm2, %v526_v23 }
 0x5e1   :  { %v574_v24 = vpop.f32.mrb[0].mxu0 }
 0x5e2   :  { %580 = vst [vmem:[#allocation2] sm:$0xff] %v574_v24  ;;  %v952_v25 = vpop.f32.mrb[1].mxu0 }
 0x5e3   :  { %v577_v26 = vpop.f32.mrb[2].mxu0 }
 0x5e4   :  { %v953_v27 = vpop.f32.mrb[3].mxu0 }
 0x5e5 PF:  { %v582_v17 = vlaneseq  ;;  %v996_v29 = vld [vmem:[#allocation13 + $0x40] sm:$0xff]   ;;  %v998_v32 = vld [vmem:[#allocation13 + $0x48] sm:$0xff]   ;;  %v1000_v35 = vld [vmem:[#allocation13 + $0x50] sm:$0xff]   ;;  %v840_v50 = vpack.c.bf16 %v1303_v2, %v1303_v2  ;;  %s1167_s22 = smov [#allocation14]  }
 0x5e6   :  { %v997_v31 = vld [vmem:[#allocation13] sm:$0xff]   ;;  %868 = vmatprep.subr.bf16.mxu0 %v996_v29  ;;  %v999_v33 = vld [vmem:[#allocation13 + $0x8] sm:$0xff]   ;;  %v1001_v36 = vld [vmem:[#allocation13 + $0x10] sm:$0xff]   ;;  %s784_s23 = sshll.u32 %s1167_s22, 4  ;;  %s785_s23 = int_to_ptr.vmem [resolvable:$true] %s784_s23 }
 0x5e7   :  { %v583_v30 = vand.u32 127, %v582_v17  ;;  %869 = vmatpush3.bf16.msra.mxu0 %v997_v31  ;;  %v1002_v37 = vld [vmem:[#allocation13 + $0x58] sm:$0xff]   ;;  %v1004_v39 = vld [vmem:[#allocation13 + $0x60] sm:$0xff]   ;;  %v1006_v41 = vld [vmem:[#allocation13 + $0x68] sm:$0xff]   ;;  %s1124_s24 = scalar_lea.vmem %s785_s23, 128  ;;  %p1129_p0 = scmp.lt.s32.totalorder %s785_s23, %s785_s23 }
 0x5e8   :  { %870 = vmatprep.subr.bf16.mxu0 %v998_v32  ;;  %v1003_v38 = vld [vmem:[#allocation13 + $0x18] sm:$0xff]   ;;  %v1005_v40 = vld [vmem:[#allocation13 + $0x20] sm:$0xff]   ;;  %v1007_v42 = vld [vmem:[#allocation13 + $0x28] sm:$0xff]   ;;  %p1125_p13 = scmp.ne.s32.totalorder %s785_s23, %s1124_s24  ;;  %p1130_p1 = scmp.lt.s32.totalorder %s1124_s24, %s1124_s24 }
 0x5e9   :  { %v581_v28 = vld [vmem:[#allocation2] sm:$0xff]  ;;  %vm584_vm5 = vcmp.eq.s32.totalorder %v583_v30, 32  ;;  %v1010_v45 = vld [vmem:[#allocation13 + $0x78] sm:$0xff]  }
 0x5ea   :  { %v585_v34 = vsel %vm584_vm5, %v581_v28, 0.0  ;;  %v1008_v43 = vld [vmem:[#allocation13 + $0x70] sm:$0xff]   ;;  %v1011_v46 = vld [vmem:[#allocation13 + $0x38] sm:$0xff]   ;;  %p1131_p2 = por %p1130_p1, %p1129_p0 }
 0x5eb   :  { %586 = vadd.xlane.f32.xlu0 %v585_v34  ;;  %871 = vmatpush3.bf16.msra.mxu0 %v999_v33  ;;  %v1009_v44 = vld [vmem:[#allocation13 + $0x30] sm:$0xff]  }
 0x5ec   :  { %872 = vmatprep.subr.bf16.mxu0 %v1000_v35  ;;  %v816_v54 = vld [vmem:[%s1339_s7] ss:$0 sm:$0xff]  ;;  %p1132_p3 = pnand %p1131_p2, %p1125_p13 }
 0x5ef   :  { %873 = vmatpush3.bf16.msra.mxu0 %v1001_v36 }
 0x5f0   :  { %874 = vmatprep.subr.bf16.mxu0 %v1002_v37 }
 0x5f3   :  { %875 = vmatpush3.bf16.msra.mxu0 %v1003_v38 }
 0x5f4   :  { %876 = vmatprep.subr.bf16.mxu0 %v1004_v39 }
 0x5f7   :  { %877 = vmatpush3.bf16.msra.mxu0 %v1005_v40 }
 0x5f8   :  { %878 = vmatprep.subr.bf16.mxu0 %v1006_v41 }
 0x5fb   :  { %879 = vmatpush3.bf16.msra.mxu0 %v1007_v42 }
 0x5fc   :  { %880 = vmatprep.subr.bf16.mxu0 %v1008_v43 }
 0x5ff   :  { %881 = vmatpush3.bf16.msra.mxu0 %v1009_v44 }
 0x600   :  { %882 = vmatprep.subr.bf16.mxu0 %v1010_v45 }
 0x603   :  { %883 = vmatpush3.bf16.msra.mxu0 %v1011_v46 }
 0x678   :  { %v587_v47 = vpop.xlane.xlu0 %586 }
 0x679   :  { %1012 = vrcp.f32 %v587_v47 }
 0x683   :  { %v1013_v48 = vpop.eup %1012 }
 0x684   :  { %v589_v49 = vmul.f32 %v1013_v48, %v581_v28 }
 0x686   :  { %v841_v51 = vpack.c.bf16 %v589_v49, %v589_v49 }
 0x688   :  { %769 = vmatprep.mubr.bf16.mxu0 %v841_v51 }
 0x689   :  { %770 = vmatmul.mubr.bf16.vlgmr.msra.gmra.mrb[0].mxu0 %v840_v50 }
 0x75c   :  { %v884_v52 = vpop.f32.mrb[0].mxu0 }
 0x75d   :  { %v885_v53 = vpop.f32.mrb[1].mxu0 }
 0x75e   :  { %v886_v55 = vadd.f32 %v885_v53, %v884_v52  ;;  %v887_v56 = vpop.f32.mrb[2].mxu0 }
 0x75f   :  { %v888_v57 = vpop.f32.mrb[3].mxu0 }
 0x760   :  { %v772_v58 = vadd.f32 %v886_v55, %v816_v54 }
 0x762   :  { %777 = vst [vmem:[#allocation14] sm:$0xff] %v772_v58 }
 0x763   :  { %1135 = shalt.err (!%p1132_p3)
}
 0x764   :  { %s1136_s27 = scalar_lea.hbm %s1340_s8, 128 }
 0x765   :  { %p1137_p4 = scmp.ne.s32.totalorder %s1340_s8, %s1136_s27  ;;  %p1140_p5 = scmp.lt.u32.totalorder %s1136_s27, %s1340_s8 }
 0x767   :  { %p1142_p6 = pnand %p1140_p5, %p1137_p4 }
 0x769   :  { %1145 = shalt.err (!%p1142_p6)
}
 0x76a   :  { %787 = dma.vmem_to_hbm [thread:$0]  %s785_s23, 128, %s1340_s8, [#allocation7]  }
 0x76b   :  { %1152 = dma.done.wait [#allocation7], 128  }
 0x76c   :  { %1153 = vsyncadd [#allocation7], 4294967168 }
 0x76d   :  { %791 = vsyncpa [#allocation6], 1 }
 0x76e   :  { %792 = vsyncpa [#allocation9], 1 }
 0x76f   :  { %793 = vsyncpa [#allocation12], 1 }
 0x770   :  { %794 = vsyncpa [#allocation7], 1 }

</bundles_post_ra>
